<compile_context>
chip_gen: v7x
topology: tpu7x:2x2x1
jax: 0.10.0
libtpu: 0.0.40
codegen_flags: <defaults>
</compile_context>

<pallas_src>
import math
import functools

import jax
import jax.numpy as jnp
from jax.experimental import pallas as pl
from jax.experimental.pallas import tpu as pltpu


def _pos_decoding_kernel(pe_ref, x_ref, out_ref, *, d_model):
    """Eval-mode kernel: out = concat([pe, x], axis=-1) via two direct slab stores.

    pe_ref:  (S, D)        VMEM (batch-invariant, stays resident across grid steps)
    x_ref:   (Bt, S, F)    VMEM
    out_ref: (Bt, S, D+F)  VMEM
    """
    D = d_model
    Bt, S, _ = x_ref.shape
    pe = jnp.broadcast_to(pe_ref[...][None, :, :], (Bt, S, D))
    out_ref[:, :, :D] = pe.astype(out_ref.dtype)
    out_ref[:, :, D:] = x_ref[...].astype(out_ref.dtype)


def _pos_decoding_dropout_kernel(pe_ref, x_ref, u_ref, out_ref, *, d_model, dropout_p):
    """Training-mode kernel: concat + inverted dropout (keep = u >= p, scale 1/(1-p)).

    u_ref: (Bt, S, D+F) float32 uniforms in [0, 1), generated in the wrapper.
    """
    D = d_model
    Bt, S, _ = x_ref.shape
    p = jnp.float32(dropout_p)
    scale = jnp.float32(1.0 / (1.0 - dropout_p))

    pe = jnp.broadcast_to(pe_ref[...][None, :, :], (Bt, S, D))
    keep_pe = u_ref[:, :, :D] >= p
    keep_x = u_ref[:, :, D:] >= p

    out_ref[:, :, :D] = jnp.where(keep_pe, pe * scale, 0.0).astype(out_ref.dtype)
    out_ref[:, :, D:] = jnp.where(keep_x, x_ref[...] * scale, 0.0).astype(out_ref.dtype)


def _sinusoidal_pe(seq_len, d_model):
    """Same formula as the registered `pe` buffer in the PyTorch module."""
    pos = jnp.arange(seq_len, dtype=jnp.float32)[:, None]
    div = jnp.exp(
        jnp.arange(0, d_model, 2, dtype=jnp.float32) * (-math.log(10000.0) / d_model)
    )
    pe = jnp.zeros((seq_len, d_model), jnp.float32)
    pe = pe.at[:, 0::2].set(jnp.sin(pos * div))
    pe = pe.at[:, 1::2].set(jnp.cos(pos * div))
    return pe


def _pick_batch_tile(B, S, F, W, itemsize, vmem_budget=8 << 20):
    """Largest divisor of B whose double-buffered (x + rand + out) block fits the budget.

    Budget of 8 MiB leaves plenty of headroom on v7x's 32 MiB scoped-VMEM default.
    """
    per_batch = S * (F + 2 * W) * itemsize * 2  # double-buffered in + rand + out
    bt = max(1, min(B, vmem_budget // max(per_batch, 1)))
    while B % bt:
        bt -= 1
    return bt


def positional_decoding_forward(x, *, d_model, dropout_p=0.0, rng=None,
                                training=True, max_len=5000, batch_tile=None):
    """Pallas implementation of PositionalDecoding.forward."""
    B, S, F = x.shape
    assert S <= max_len, "sequence length exceeds max_len of the PE buffer"
    W = d_model + F
    itemsize = jnp.dtype(x.dtype).itemsize

    pe = _sinusoidal_pe(S, d_model).astype(jnp.float32)

    use_dropout = training and float(dropout_p) > 0.0
    if use_dropout and rng is None:
        rng = jax.random.PRNGKey(0)

    Bt = batch_tile if batch_tile is not None else _pick_batch_tile(B, S, F, W, itemsize)
    assert B % Bt == 0, "batch tile must divide batch"
    grid = (B // Bt,)

    pe_spec = pl.BlockSpec((S, d_model), lambda b: (0, 0))       # batch-invariant -> resident
    x_spec = pl.BlockSpec((Bt, S, F), lambda b: (b, 0, 0))
    out_spec = pl.BlockSpec((Bt, S, W), lambda b: (b, 0, 0))

    if use_dropout:
        u = jax.random.uniform(rng, (B, S, W), jnp.float32)
        kernel = functools.partial(
            _pos_decoding_dropout_kernel, d_model=d_model, dropout_p=float(dropout_p)
        )
        in_specs = [pe_spec, x_spec, pl.BlockSpec((Bt, S, W), lambda b: (b, 0, 0))]
        args = (pe, x, u)
    else:
        kernel = functools.partial(_pos_decoding_kernel, d_model=d_model)
        in_specs = [pe_spec, x_spec]
        args = (pe, x)

    return pl.pallas_call(
        kernel,
        out_shape=jax.ShapeDtypeStruct((B, S, W), x.dtype),
        grid=grid,
        in_specs=in_specs,
        out_specs=out_spec,
        compiler_params=pltpu.CompilerParams(dimension_semantics=("parallel",)),
    )(*args)


if __name__ == "__main__":
    d_model = 32
    dropout_p = 0.1
    B, S, F = 2, 8, 65  # lut = nn.Linear(65, d_model) implies x feature dim 65

    key = jax.random.PRNGKey(0)
    k_x, k_drop = jax.random.split(key)
    x = jax.random.normal(k_x, (B, S, F), jnp.float32)

    # Pure-JAX reference for the deterministic concat part.
    pe = _sinusoidal_pe(S, d_model)
    ref = jnp.concatenate([jnp.broadcast_to(pe[None], (B, S, d_model)), x], axis=-1)

    # Eval mode (dropout inactive) must match the reference.
    out_eval = positional_decoding_forward(
        x, d_model=d_model, dropout_p=dropout_p, training=False
    )
    jax.block_until_ready(out_eval)
    assert out_eval.shape == (B, S, d_model + F)
    assert jnp.allclose(out_eval, ref, atol=1e-6, rtol=1e-6), "eval-mode mismatch vs reference"

    # Training mode: inverted dropout with uniforms derived from the same key the
    # wrapper uses, so the expected output is reproducible here.
    out_train = positional_decoding_forward(
        x, d_model=d_model, dropout_p=dropout_p, rng=k_drop, training=True
    )
    jax.block_until_ready(out_train)
    u = jax.random.uniform(k_drop, (B, S, d_model + F), jnp.float32)
    expected = jnp.where(u >= dropout_p, ref * (1.0 / (1.0 - dropout_p)), 0.0)
    assert out_train.shape == (B, S, d_model + F)
    assert jnp.allclose(out_train, expected, atol=1e-5, rtol=1e-5), "train-mode mismatch"

    print("KERNEL_OK")
</pallas_src>

<mosaic_0001>
module attributes {stable_mosaic.version = 11 : i64} {
  func.func @_pos_decoding_kernel(%arg0: i32, %arg1: memref<8x32xf32, #tpu.memory_space<vmem>>, %arg2: memref<2x8x65xf32, #tpu.memory_space<vmem>>, %arg3: memref<2x8x97xf32, #tpu.memory_space<vmem>>) attributes {dimension_semantics = [#tpu.dimension_semantics<parallel>], iteration_bounds = array<i64: 1>, scalar_prefetch = 0 : i64, scratch_operands = 0 : i64, tpu.core_type = #tpu.core_type<tc>, window_params = [{pipeline_mode = #tpu.pipeline_mode<synchronous>, transform_indices = @transform_0, window_bounds = array<i64: 8, 32>}, {transform_indices = @transform_1, window_bounds = array<i64: 2, 8, 65>}, {transform_indices = @transform_2, window_bounds = array<i64: 2, 8, 97>}]} {
    %c0 = arith.constant 0 : index
    %c0_0 = arith.constant 0 : index
    %0 = vector.load %arg1[%c0, %c0_0] : memref<8x32xf32, #tpu.memory_space<vmem>>, vector<8x32xf32>
    %1 = vector.shape_cast %0 : vector<8x32xf32> to vector<1x8x32xf32>
    %2 = vector.shape_cast %1 : vector<1x8x32xf32> to vector<1x8x32xf32>
    %3 = vector.broadcast %2 : vector<1x8x32xf32> to vector<2x8x32xf32>
    %c0_1 = arith.constant 0 : index
    %c0_2 = arith.constant 0 : index
    %c0_3 = arith.constant 0 : index
    %4 = vector.load %arg3[%c0_1, %c0_2, %c0_3] : memref<2x8x97xf32, #tpu.memory_space<vmem>>, vector<2x8x32xf32>
    tpu.vector_store %arg3[%c0_1, %c0_2, %c0_3], %3 {strides = array<i32>} : memref<2x8x97xf32, #tpu.memory_space<vmem>>, vector<2x8x32xf32>,
    %c0_4 = arith.constant 0 : index
    %c0_5 = arith.constant 0 : index
    %c0_6 = arith.constant 0 : index
    %5 = vector.load %arg2[%c0_4, %c0_5, %c0_6] : memref<2x8x65xf32, #tpu.memory_space<vmem>>, vector<2x8x65xf32>
    %c0_7 = arith.constant 0 : index
    %c0_8 = arith.constant 0 : index
    %c32 = arith.constant 32 : index
    %6 = vector.load %arg3[%c0_7, %c0_8, %c32] : memref<2x8x97xf32, #tpu.memory_space<vmem>>, vector<2x8x65xf32>
    tpu.vector_store %arg3[%c0_7, %c0_8, %c32], %5 {strides = array<i32>} : memref<2x8x97xf32, #tpu.memory_space<vmem>>, vector<2x8x65xf32>,
    return
  }
  func.func @transform_0(%arg0: i32) -> (i32, i32) {
    %c0_i32 = arith.constant 0 : i32
    %c0_i32_0 = arith.constant 0 : i32
    %c0_i32_1 = arith.constant 0 : i32
    return %c0_i32, %c0_i32_0 : i32, i32
  }
  func.func @transform_1(%arg0: i32) -> (i32, i32, i32) {
    %c0_i32 = arith.constant 0 : i32
    %c0_i32_0 = arith.constant 0 : i32
    %c0_i32_1 = arith.constant 0 : i32
    return %arg0, %c0_i32, %c0_i32_0 : i32, i32, i32
  }
  func.func @transform_2(%arg0: i32) -> (i32, i32, i32) {
    %c0_i32 = arith.constant 0 : i32
    %c0_i32_0 = arith.constant 0 : i32
    %c0_i32_1 = arith.constant 0 : i32
    return %arg0, %c0_i32, %c0_i32_0 : i32, i32, i32
  }
}

</mosaic_0001>

<bundles_post_ra>
// kernel: tpu_custom_call.1
= control target key start
LH: loop header
LB: loop body
LE: loop exit
PB: predicated region body
PF: predicated region fallthrough
CT: control target
= control target key end

     0   :  { %7 = vsyncpa [#allocation3], 0  ;;  %s221_s0 = inlined_call_operand.hbm [shape: f32[8,32], index: 0, kind: input, shape index: {}]   ;;  %s222_s1 = inlined_call_operand.hbm [shape: f32[2,8,65], index: 1, kind: input, shape index: {}]   ;;  %s223_s2 = inlined_call_operand.hbm [shape: f32[2,8,97], index: 2, kind: output, shape index: {}]  }
   0x1   :  { %8 = vsyncpa [#allocation6], 0 }
   0x2   :  { %9 = vsyncpa [#allocation4], 0  ;;  %s151_s9 = smov [#allocation2]   ;;  %s152_s11 = smov [#allocation5]  }
   0x3   :  { %s16_s10 = sshll.u32 %s151_s9, 4  ;;  %s25_s12 = sshll.u32 %s152_s11, 4  ;;  %s17_s10 = int_to_ptr.vmem [resolvable:$true] %s16_s10  ;;  %s172_s12 = int_to_ptr.vmem [resolvable:$true] %s25_s12 }
   0x4   :  { %s79_s15 = scalar_lea.hbm %s221_s0, 128 }
   0x5   :  { %p80_p0 = scmp.ne.s32.totalorder %s221_s0, %s79_s15  ;;  %p83_p1 = scmp.lt.u32.totalorder %s79_s15, %s221_s0 }
   0x7   :  { %p85_p2 = pnand %p83_p1, %p80_p0 }
   0x9   :  { %88 = shalt.err (!%p85_p2)
}
   0xa   :  { %s89_s20 = scalar_lea.vmem %s17_s10, 128  ;;  %p94_p4 = scmp.lt.s32.totalorder %s17_s10, %s17_s10 }
   0xb   :  { %p90_p3 = scmp.ne.s32.totalorder %s17_s10, %s89_s20  ;;  %p95_p5 = scmp.lt.s32.totalorder %s89_s20, %s89_s20 }
   0xd   :  { %p96_p6 = por %p95_p5, %p94_p4 }
   0xf   :  { %p97_p7 = pnand %p96_p6, %p90_p3 }
  0x11   :  { %100 = shalt.err (!%p97_p7)
}
  0x12   :  { %19 = dma.hbm_to_vmem [thread:$0]  %s221_s0, 128, %s17_s10, [#allocation3]  }
  0x13   :  { %s101_s25 = scalar_lea.hbm %s222_s1, 256 }
  0x14   :  { %p102_p8 = scmp.ne.s32.totalorder %s222_s1, %s101_s25  ;;  %p105_p9 = scmp.lt.u32.totalorder %s101_s25, %s222_s1 }
  0x16   :  { %p107_p10 = pnand %p105_p9, %p102_p8 }
  0x18   :  { %110 = shalt.err (!%p107_p10)
}
  0x19   :  { %s111_s30 = scalar_lea.vmem %s172_s12, 256  ;;  %p116_p12 = scmp.lt.s32.totalorder %s172_s12, %s172_s12 }
  0x1a   :  { %p112_p11 = scmp.ne.s32.totalorder %s172_s12, %s111_s30  ;;  %p117_p13 = scmp.lt.s32.totalorder %s111_s30, %s111_s30 }
  0x1c   :  { %p118_p0 = por %p117_p13, %p116_p12 }
  0x1e   :  { %p119_p1 = pnand %p118_p0, %p112_p11 }
  0x20   :  { %122 = shalt.err (!%p119_p1)
}
  0x21   :  { %s153_s0 = smov 128   ;;  %s154_s3 = smov 8  }
  0x22   :  { %31 = dma.hbm_to_vmem [thread:$0]  %s222_s1, 256, %s172_s12, [#allocation6], %s153_s0, %s153_s0, %s154_s3  }
  0x23   :  { %145 = dma.done.wait [#allocation3], 128  }
  0x24   :  { %146 = vsyncadd [#allocation3], 4294967168 }
  0x25   :  { %147 = dma.done.wait [#allocation6], 256  }
  0x26   :  { %148 = vsyncadd [#allocation6], 4294967040  ;;  %vm39_vm0 = vcmask 261120   ;;  %v42_v0 = vld [vmem:[#allocation5] sm:$0xff]  ;;  %v38_v1 = vld [vmem:[#allocation2] sm:$0xff]  ;;  %s155_s6 = smov 32  }
  0x27   :  { %46 = vrot.lane.b32.xlu0 %v42_v0, %s155_s6  ;;  %40 = vst.msk [vmem:[#allocation7] sm:$0xff] %vm39_vm0, %v38_v1  ;;  %41 = vst.msk [vmem:[#allocation7 + $0x8] sm:$0xff] %vm39_vm0, %v38_v1  ;;  %v43_v2 = vld [vmem:[#allocation5 + $0x8] sm:$0xff]  ;;  %vm52_vm1 = vcmask 793856   ;;  %s156_s7 = smov [#allocation7]  }
  0x28   :  { %s60_s8 = sshll.u32 %s156_s7, 4  ;;  %s61_s8 = int_to_ptr.vmem [resolvable:$true] %s60_s8 }
  0x29   :  { %s123_s1 = scalar_lea.vmem %s61_s8, 256  ;;  %p128_p3 = scmp.lt.s32.totalorder %s61_s8, %s61_s8 }
  0x2a   :  { %p124_p2 = scmp.ne.s32.totalorder %s61_s8, %s123_s1  ;;  %p129_p4 = scmp.lt.s32.totalorder %s123_s1, %s123_s1 }
  0x2b   :  { %48 = vrot.lane.b32.xlu0 %v43_v2, %s155_s6 }
  0x2c   :  { %p130_p5 = por %p129_p4, %p128_p3 }
  0x2e   :  { %p131_p6 = pnand %p130_p5, %p124_p2 }
  0x99   :  { %v47_v3 = vpop.permute.xlu0 %46 }
  0x9a   :  { %53 = vst.msk [vmem:[#allocation7] sm:$0xff] %vm52_vm1, %v47_v3 }
  0x9d   :  { %v49_v4 = vpop.permute.xlu0 %48 }
  0x9e   :  { %54 = vst.msk [vmem:[#allocation7 + $0x8] sm:$0xff] %vm52_vm1, %v49_v4 }
  0x9f   :  { %134 = shalt.err (!%p131_p6)
}
  0xa0   :  { %s135_s11 = scalar_lea.hbm %s223_s2, 256 }
  0xa1   :  { %p136_p7 = scmp.ne.s32.totalorder %s223_s2, %s135_s11  ;;  %p139_p8 = scmp.lt.u32.totalorder %s135_s11, %s223_s2 }
  0xa3   :  { %p141_p9 = pnand %p139_p8, %p136_p7 }
  0xa5   :  { %144 = shalt.err (!%p141_p9)
}
  0xa6   :  { %66 = dma.vmem_to_hbm [thread:$0]  %s61_s8, 256, %s223_s2, [#allocation4], %s153_s0, %s153_s0, %s154_s3  }
  0xa7   :  { %149 = dma.done.wait [#allocation4], 256  }
  0xa8   :  { %150 = vsyncadd [#allocation4], 4294967040 }
  0xa9   :  { %70 = vsyncpa [#allocation3], 1 }
  0xaa   :  { %71 = vsyncpa [#allocation6], 1 }
  0xab   :  { %72 = vsyncpa [#allocation4], 1 }

</bundles_post_ra>
